<compile_context>
chip_gen: v6e
topology: v6e:2x2x1
jax: 0.10.0
libtpu: 0.0.40
codegen_flags: <defaults>
</compile_context>

<pallas_src>
import functools

import jax
import jax.numpy as jnp
from jax.experimental import pallas as pl
from jax.experimental.pallas import tpu as pltpu


def _round_up(n, m):
    return ((n + m - 1) // m) * m


# -----------------------------------------------------------------------------
# Kernel
# -----------------------------------------------------------------------------
def vae_kernel(x_ref, eps_ref,
               w1_ref, wstack_ref, wh_ref, dw3_ref, dw6_ref,
               bstack_ref, bh_ref, db6_ref,
               recon_ref, mulogvar_ref):
    """Fused VAE forward for one batch tile (all weights resident in VMEM).

    wstack holds [w2, w3, w4, dw4, dw5] (the five (Hp,Hp) matrices).
    bstack holds [b1, b2, b3, b4, db3, db4, db5, pad] as rows of an (8,Hp) blk.
    Matmul operands are bf16 (MXU) with f32 accumulation; bias adds, ReLU,
    exp and sigmoid are f32; activations are down-cast to bf16 between layers.
    """

    def matmul(h_bf16, w_bf16):
        return jnp.dot(h_bf16, w_bf16, preferred_element_type=jnp.float32)

    def relu_bf16(y_f32):
        return jnp.maximum(y_f32, 0.0).astype(jnp.bfloat16)

    # ---------------- encoder ----------------
    h = relu_bf16(matmul(x_ref[...], w1_ref[...]) + bstack_ref[0:1, :])
    h = relu_bf16(matmul(h, wstack_ref[0]) + bstack_ref[1:2, :])
    h = relu_bf16(matmul(h, wstack_ref[1]) + bstack_ref[2:3, :])
    h = relu_bf16(matmul(h, wstack_ref[2]) + bstack_ref[3:4, :])

    # Fused (mu | logvar) head: one wide matmul, one lane-dense output store.
    ml = matmul(h, wh_ref[...]) + bh_ref[...]            # (tile, 2*Lp) f32
    mulogvar_ref[...] = ml.astype(mulogvar_ref.dtype)

    lp = ml.shape[-1] // 2                               # static, lane-aligned
    mu = ml[:, :lp]
    logvar = ml[:, lp:]

    # ---------------- reparameterize (f32) ----------------
    # TODO(synk): could use pltpu.prng_seed + pltpu.prng_random_bits to draw
    # eps in-kernel; host-provided eps kept for deterministic testing.
    z = mu + eps_ref[...] * jnp.exp(0.5 * logvar)

    # ---------------- decoder ----------------
    d = relu_bf16(matmul(z.astype(jnp.bfloat16), dw3_ref[...]) + bstack_ref[4:5, :])
    d = relu_bf16(matmul(d, wstack_ref[3]) + bstack_ref[5:6, :])
    d = relu_bf16(matmul(d, wstack_ref[4]) + bstack_ref[6:7, :])
    recon_ref[...] = jax.nn.sigmoid(
        matmul(d, dw6_ref[...]) + db6_ref[...]).astype(recon_ref.dtype)


# -----------------------------------------------------------------------------
# One-time weight preparation (hoisted out of the per-call path)
# -----------------------------------------------------------------------------
def prepare_params(params):
    """Pad to (8,128)-aligned shapes, cast weights to bf16, coalesce blocks.

    Returns (weights_tuple, dims). Call once and reuse across forward calls.
    """
    input_dim, hidden_dim = params["w1"].shape
    latent_dim = params["w41"].shape[1]

    Ip = _round_up(input_dim, 128)
    Hp = _round_up(hidden_dim, 128)
    Lp = _round_up(latent_dim, 128)

    wdt = jnp.bfloat16  # bf16 weights -> half the weight DMA / VMEM

    def pad2(a, rows, cols, dtype):
        return jnp.pad(a, ((0, rows - a.shape[0]),
                           (0, cols - a.shape[1]))).astype(dtype)

    w1 = pad2(params["w1"], Ip, Hp, wdt)
    # Coalesce the five square (Hp,Hp) matrices into one contiguous block.
    wstack = jnp.stack([pad2(params["w2"], Hp, Hp, wdt),
                        pad2(params["w3"], Hp, Hp, wdt),
                        pad2(params["w4"], Hp, Hp, wdt),
                        pad2(params["dw4"], Hp, Hp, wdt),
                        pad2(params["dw5"], Hp, Hp, wdt)])
    # Fused (mu | logvar) head: (Hp, 2*Lp) weight + (1, 2*Lp) bias.
    wh = jnp.concatenate([pad2(params["w41"], Hp, Lp, wdt),
                          pad2(params["w42"], Hp, Lp, wdt)], axis=1)
    dw3 = pad2(params["dw3"], Lp, Hp, wdt)
    dw6 = pad2(params["dw6"], Hp, Ip, wdt)

    # Coalesce the seven (1,Hp) biases into one (8,Hp) f32 block (row 7 = pad).
    bstack = jnp.concatenate(
        [pad2(params[k], 1, Hp, jnp.float32)
         for k in ("b1", "b2", "b3", "b4", "db3", "db4", "db5")]
        + [jnp.zeros((1, Hp), jnp.float32)], axis=0)
    bh = jnp.concatenate([pad2(params["b41"], 1, Lp, jnp.float32),
                          pad2(params["b42"], 1, Lp, jnp.float32)], axis=1)
    db6 = pad2(params["db6"], 1, Ip, jnp.float32)

    weights = (w1, wstack, wh, dw3, dw6, bstack, bh, db6)
    dims = dict(input_dim=input_dim, hidden_dim=hidden_dim,
                latent_dim=latent_dim, Ip=Ip, Hp=Hp, Lp=Lp)
    return weights, dims


# -----------------------------------------------------------------------------
# Forward wrapper (jitted)
# -----------------------------------------------------------------------------
@functools.partial(jax.jit, static_argnames=("batch_tile", "num_cores"))
def _vae_forward_prepared(x, eps, weights, *, batch_tile, num_cores):
    w1, wstack, wh, dw3, dw6, bstack, bh, db6 = weights
    B, input_dim = x.shape
    latent_dim = eps.shape[1]
    Ip, Hp = w1.shape
    Lp = dw3.shape[0]

    # Grid first, then tile = ceil(B/grid): avoids over-padding awkward batch
    # sizes; num_cores=2 guarantees >=2 "parallel" grid steps for v7x megacore.
    grid_n = max(num_cores, pl.cdiv(B, batch_tile))
    tile = _round_up(pl.cdiv(B, grid_n), 8)
    Bp = grid_n * tile

    x_p = jnp.pad(x.astype(jnp.bfloat16),
                  ((0, Bp - B), (0, Ip - input_dim)))         # bf16 input DMA
    eps_p = jnp.pad(eps.astype(jnp.float32),
                    ((0, Bp - B), (0, Lp - latent_dim)))      # f32 reparam path

    weight_bytes = sum(int(a.size) * a.dtype.itemsize for a in weights)
    # Single-buffer the grid-invariant weight blocks when double-buffering them
    # would waste meaningful VMEM (v7x has only 64 MiB per TC).
    single_buffer_weights = weight_bytes > (16 << 20)

    def rep(arr):
        idx = (lambda i: (0, 0)) if arr.ndim == 2 else (lambda i: (0, 0, 0))
        if single_buffer_weights:
            return pl.BlockSpec(arr.shape, idx, pipeline_mode=pl.Buffered(1))
        return pl.BlockSpec(arr.shape, idx)

    in_specs = [pl.BlockSpec((tile, Ip), lambda i: (i, 0)),      # x (bf16)
                pl.BlockSpec((tile, Lp), lambda i: (i, 0))]      # eps (f32)
    in_specs += [rep(a) for a in weights]

    out_specs = (
        pl.BlockSpec((tile, Ip), lambda i: (i, 0)),              # recon
        pl.BlockSpec((tile, 2 * Lp), lambda i: (i, 0)),          # mu | logvar
    )
    out_shape = (
        jax.ShapeDtypeStruct((Bp, Ip), jnp.float32),
        jax.ShapeDtypeStruct((Bp, 2 * Lp), jnp.float32),
    )

    # VMEM budget from actual buffer sizes + headroom (not a blanket 64 MiB).
    weight_vmem = weight_bytes * (1 if single_buffer_weights else 2)
    io_vmem = 2 * tile * (Ip * 2 + Lp * 4 + Ip * 4 + 2 * Lp * 4)  # dbl-buffered I/O
    act_vmem = tile * (4 * Hp * 2 + Hp * 4 + 2 * Lp * 4 + Ip * 4)  # live activations
    vmem_limit = max(32 << 20,
                     int((weight_vmem + io_vmem + act_vmem) * 1.25) + (2 << 20))

    flops = 2 * Bp * (Ip * Hp + 3 * Hp * Hp + Hp * 2 * Lp          # encoder
                      + Lp * Hp + 2 * Hp * Hp + Hp * Ip)           # decoder
    transcendentals = Bp * (Lp + Ip)                               # exp + sigmoid
    bytes_accessed = int(x_p.size * 2 + eps_p.size * 4 + weight_bytes
                         + Bp * Ip * 4 + Bp * 2 * Lp * 4)

    recon_p, ml_p = pl.pallas_call(
        vae_kernel,
        grid=(grid_n,),
        in_specs=in_specs,
        out_specs=out_specs,
        out_shape=out_shape,
        compiler_params=pltpu.CompilerParams(
            dimension_semantics=("parallel",),     # shard batch steps over TCs
            vmem_limit_bytes=int(vmem_limit)),
        cost_estimate=pl.CostEstimate(
            flops=int(flops),
            transcendentals=int(transcendentals),
            bytes_accessed=bytes_accessed),
    )(x_p, eps_p, *weights)

    recon = recon_p[:B, :input_dim]
    mu = ml_p[:B, :latent_dim]
    logvar = ml_p[:B, Lp:Lp + latent_dim]
    return recon, mu, logvar


def vae_forward(x, eps, prepared_weights, *, batch_tile=512, num_cores=1):
    """VAE.forward: returns (recon, mu, logvar).

    x: (B, input_dim) f32, eps: (B, latent_dim) f32 standard-normal noise.
    prepared_weights: output of prepare_params(params)[0].
    batch_tile: max batch rows per grid step (use one fat tile on v5e/v6e).
    num_cores: set to 2 on v7x so both TensorCores get a grid step for B<=tile.
    """
    return _vae_forward_prepared(x, eps, prepared_weights,
                                 batch_tile=batch_tile, num_cores=num_cores)


# -----------------------------------------------------------------------------
# Synthetic init + pure-JAX reference
# -----------------------------------------------------------------------------
def init_params(key, input_dim, hidden_dim, latent_dim):
    """Deterministic synthetic init (Linear weights stored as (in, out))."""
    dims = [
        ("w1", "b1", input_dim, hidden_dim),
        ("w2", "b2", hidden_dim, hidden_dim),
        ("w3", "b3", hidden_dim, hidden_dim),
        ("w4", "b4", hidden_dim, hidden_dim),
        ("w41", "b41", hidden_dim, latent_dim),
        ("w42", "b42", hidden_dim, latent_dim),
        ("dw3", "db3", latent_dim, hidden_dim),
        ("dw4", "db4", hidden_dim, hidden_dim),
        ("dw5", "db5", hidden_dim, hidden_dim),
        ("dw6", "db6", hidden_dim, input_dim),
    ]
    params = {}
    for wname, bname, din, dout in dims:
        key, kw, kb = jax.random.split(key, 3)
        bound = 1.0 / jnp.sqrt(din)
        params[wname] = jax.random.uniform(
            kw, (din, dout), jnp.float32, minval=-bound, maxval=bound)
        params[bname] = jax.random.uniform(
            kb, (1, dout), jnp.float32, minval=-bound, maxval=bound)
    return params


def vae_ref(x, eps, params):
    """Pure-JAX reference mirroring the kernel numerics
    (bf16 matmul operands / activations, f32 accumulation & reparam path)."""
    def linear(h, w, b):
        return jnp.dot(h.astype(jnp.bfloat16), w.astype(jnp.bfloat16),
                       preferred_element_type=jnp.float32) + b

    def relu_bf16(y):
        return jnp.maximum(y, 0.0).astype(jnp.bfloat16)

    h = relu_bf16(linear(x, params["w1"], params["b1"]))
    h = relu_bf16(linear(h, params["w2"], params["b2"]))
    h = relu_bf16(linear(h, params["w3"], params["b3"]))
    h = relu_bf16(linear(h, params["w4"], params["b4"]))
    mu = linear(h, params["w41"], params["b41"])
    logvar = linear(h, params["w42"], params["b42"])
    z = mu + eps * jnp.exp(0.5 * logvar)
    d = relu_bf16(linear(z, params["dw3"], params["db3"]))
    d = relu_bf16(linear(d, params["dw4"], params["db4"]))
    d = relu_bf16(linear(d, params["dw5"], params["db5"]))
    recon = jax.nn.sigmoid(linear(d, params["dw6"], params["db6"]))
    return recon, mu, logvar


if __name__ == "__main__":
    key = jax.random.PRNGKey(0)
    k_params, k_x, k_eps = jax.random.split(key, 3)

    batch, input_dim, hidden_dim, latent_dim = 24, 64, 32, 16
    params = init_params(k_params, input_dim, hidden_dim, latent_dim)
    x = jax.random.normal(k_x, (batch, input_dim), jnp.float32)
    eps = jax.random.normal(k_eps, (batch, latent_dim), jnp.float32)

    # One-time weight padding / casting / packing (hoisted out of forward).
    weights, _dims = prepare_params(params)
    weights = jax.block_until_ready(weights)

    recon_r, mu_r, logvar_r = vae_ref(x, eps, params)

    # Small-tile path: exercises batch padding (24 -> 2 x 16 rows) and a
    # multi-step "parallel" grid (what v7x with num_cores=2 would use).
    recon, mu, logvar = vae_forward(x, eps, weights, batch_tile=16)
    jax.block_until_ready((recon, mu, logvar))
    assert recon.shape == (batch, input_dim)
    assert mu.shape == (batch, latent_dim) and logvar.shape == (batch, latent_dim)
    assert jnp.allclose(mu, mu_r, atol=1e-2, rtol=1e-2)
    assert jnp.allclose(logvar, logvar_r, atol=1e-2, rtol=1e-2)
    assert jnp.allclose(recon, recon_r, atol=1e-2, rtol=1e-2)

    # Default path: one fat batch tile (preferred on single-TC v5e/v6e).
    recon2, mu2, logvar2 = vae_forward(x, eps, weights)
    jax.block_until_ready((recon2, mu2, logvar2))
    assert jnp.allclose(recon2, recon_r, atol=1e-2, rtol=1e-2)
    assert jnp.allclose(mu2, mu_r, atol=1e-2, rtol=1e-2)
    assert jnp.allclose(logvar2, logvar_r, atol=1e-2, rtol=1e-2)

    print("KERNEL_OK")
</pallas_src>

<mosaic_0001>
module attributes {stable_mosaic.version = 11 : i64} {
  func.func @vae_kernel(%arg0: i32, %arg1: memref<16x128xbf16, #tpu.memory_space<vmem>>, %arg2: memref<16x128xf32, #tpu.memory_space<vmem>>, %arg3: memref<128x128xbf16, #tpu.memory_space<vmem>>, %arg4: memref<5x128x128xbf16, #tpu.memory_space<vmem>>, %arg5: memref<128x256xbf16, #tpu.memory_space<vmem>>, %arg6: memref<128x128xbf16, #tpu.memory_space<vmem>>, %arg7: memref<128x128xbf16, #tpu.memory_space<vmem>>, %arg8: memref<8x128xf32, #tpu.memory_space<vmem>>, %arg9: memref<1x256xf32, #tpu.memory_space<vmem>>, %arg10: memref<1x128xf32, #tpu.memory_space<vmem>>, %arg11: memref<16x128xf32, #tpu.memory_space<vmem>>, %arg12: memref<16x256xf32, #tpu.memory_space<vmem>>) attributes {dimension_semantics = [#tpu.dimension_semantics<parallel>], iteration_bounds = array<i64: 2>, scalar_prefetch = 0 : i64, scratch_operands = 0 : i64, tpu.core_type = #tpu.core_type<tc>, window_params = [{transform_indices = @transform_0, window_bounds = array<i64: 16, 128>}, {transform_indices = @transform_1, window_bounds = array<i64: 16, 128>}, {pipeline_mode = #tpu.pipeline_mode<synchronous>, transform_indices = @transform_2, window_bounds = array<i64: 128, 128>}, {pipeline_mode = #tpu.pipeline_mode<synchronous>, transform_indices = @transform_3, window_bounds = array<i64: 5, 128, 128>}, {pipeline_mode = #tpu.pipeline_mode<synchronous>, transform_indices = @transform_4, window_bounds = array<i64: 128, 256>}, {pipeline_mode = #tpu.pipeline_mode<synchronous>, transform_indices = @transform_5, window_bounds = array<i64: 128, 128>}, {pipeline_mode = #tpu.pipeline_mode<synchronous>, transform_indices = @transform_6, window_bounds = array<i64: 128, 128>}, {pipeline_mode = #tpu.pipeline_mode<synchronous>, transform_indices = @transform_7, window_bounds = array<i64: 8, 128>}, {pipeline_mode = #tpu.pipeline_mode<synchronous>, transform_indices = @transform_8, window_bounds = array<i64: 1, 256>}, {pipeline_mode = #tpu.pipeline_mode<synchronous>, transform_indices = @transform_9, window_bounds = array<i64: 1, 128>}, {transform_indices = @transform_10, window_bounds = array<i64: 16, 128>}, {transform_indices = @transform_11, window_bounds = array<i64: 16, 256>}]} {
    %c0 = arith.constant 0 : index
    %c0_0 = arith.constant 0 : index
    %0 = vector.load %arg1[%c0, %c0_0] : memref<16x128xbf16, #tpu.memory_space<vmem>>, vector<16x128xbf16>
    %c0_1 = arith.constant 0 : index
    %c0_2 = arith.constant 0 : index
    %1 = vector.load %arg3[%c0_1, %c0_2] : memref<128x128xbf16, #tpu.memory_space<vmem>>, vector<128x128xbf16>
    %cst = arith.constant dense<0.000000e+00> : vector<16x128xf32>
    %2 = tpu.matmul %0, %1, %cst {dimension_numbers = #tpu.dot_dimension_numbers<[1], [0], [0], [1], [0, 0, 1, 1], [], []>} : vector<16x128xbf16>, vector<128x128xbf16>, vector<16x128xf32> -> vector<16x128xf32>
    %c0_3 = arith.constant 0 : index
    %c0_4 = arith.constant 0 : index
    %3 = vector.load %arg8[%c0_3, %c0_4] : memref<8x128xf32, #tpu.memory_space<vmem>>, vector<1x128xf32>
    %4 = vector.broadcast %3 : vector<1x128xf32> to vector<16x128xf32>
    %5 = arith.addf %2, %4 : vector<16x128xf32>
    %cst_5 = arith.constant 0.000000e+00 : f32
    %6 = vector.broadcast %cst_5 : f32 to vector<16x128xf32>
    %7 = arith.maximumf %5, %6 : vector<16x128xf32>
    %8 = arith.truncf %7 : vector<16x128xf32> to vector<16x128xbf16>
    %c0_6 = arith.constant 0 : index
    %c0_7 = arith.constant 0 : index
    %c0_8 = arith.constant 0 : index
    %9 = vector.load %arg4[%c0_6, %c0_7, %c0_8] : memref<5x128x128xbf16, #tpu.memory_space<vmem>>, vector<1x128x128xbf16>
    %10 = vector.shape_cast %9 : vector<1x128x128xbf16> to vector<128x128xbf16>
    %cst_9 = arith.constant dense<0.000000e+00> : vector<16x128xf32>
    %11 = tpu.matmul %8, %10, %cst_9 {dimension_numbers = #tpu.dot_dimension_numbers<[1], [0], [0], [1], [0, 0, 1, 1], [], []>} : vector<16x128xbf16>, vector<128x128xbf16>, vector<16x128xf32> -> vector<16x128xf32>
    %c1 = arith.constant 1 : index
    %c0_10 = arith.constant 0 : index
    %12 = vector.load %arg8[%c1, %c0_10] : memref<8x128xf32, #tpu.memory_space<vmem>>, vector<1x128xf32>
    %13 = vector.broadcast %12 : vector<1x128xf32> to vector<16x128xf32>
    %14 = arith.addf %11, %13 : vector<16x128xf32>
    %cst_11 = arith.constant 0.000000e+00 : f32
    %15 = vector.broadcast %cst_11 : f32 to vector<16x128xf32>
    %16 = arith.maximumf %14, %15 : vector<16x128xf32>
    %17 = arith.truncf %16 : vector<16x128xf32> to vector<16x128xbf16>
    %c1_12 = arith.constant 1 : index
    %c0_13 = arith.constant 0 : index
    %c0_14 = arith.constant 0 : index
    %18 = vector.load %arg4[%c1_12, %c0_13, %c0_14] : memref<5x128x128xbf16, #tpu.memory_space<vmem>>, vector<1x128x128xbf16>
    %19 = vector.shape_cast %18 : vector<1x128x128xbf16> to vector<128x128xbf16>
    %cst_15 = arith.constant dense<0.000000e+00> : vector<16x128xf32>
    %20 = tpu.matmul %17, %19, %cst_15 {dimension_numbers = #tpu.dot_dimension_numbers<[1], [0], [0], [1], [0, 0, 1, 1], [], []>} : vector<16x128xbf16>, vector<128x128xbf16>, vector<16x128xf32> -> vector<16x128xf32>
    %c2 = arith.constant 2 : index
    %c0_16 = arith.constant 0 : index
    %21 = vector.load %arg8[%c2, %c0_16] : memref<8x128xf32, #tpu.memory_space<vmem>>, vector<1x128xf32>
    %22 = vector.broadcast %21 : vector<1x128xf32> to vector<16x128xf32>
    %23 = arith.addf %20, %22 : vector<16x128xf32>
    %cst_17 = arith.constant 0.000000e+00 : f32
    %24 = vector.broadcast %cst_17 : f32 to vector<16x128xf32>
    %25 = arith.maximumf %23, %24 : vector<16x128xf32>
    %26 = arith.truncf %25 : vector<16x128xf32> to vector<16x128xbf16>
    %c2_18 = arith.constant 2 : index
    %c0_19 = arith.constant 0 : index
    %c0_20 = arith.constant 0 : index
    %27 = vector.load %arg4[%c2_18, %c0_19, %c0_20] : memref<5x128x128xbf16, #tpu.memory_space<vmem>>, vector<1x128x128xbf16>
    %28 = vector.shape_cast %27 : vector<1x128x128xbf16> to vector<128x128xbf16>
    %cst_21 = arith.constant dense<0.000000e+00> : vector<16x128xf32>
    %29 = tpu.matmul %26, %28, %cst_21 {dimension_numbers = #tpu.dot_dimension_numbers<[1], [0], [0], [1], [0, 0, 1, 1], [], []>} : vector<16x128xbf16>, vector<128x128xbf16>, vector<16x128xf32> -> vector<16x128xf32>
    %c3 = arith.constant 3 : index
    %c0_22 = arith.constant 0 : index
    %30 = vector.load %arg8[%c3, %c0_22] : memref<8x128xf32, #tpu.memory_space<vmem>>, vector<1x128xf32>
    %31 = vector.broadcast %30 : vector<1x128xf32> to vector<16x128xf32>
    %32 = arith.addf %29, %31 : vector<16x128xf32>
    %cst_23 = arith.constant 0.000000e+00 : f32
    %33 = vector.broadcast %cst_23 : f32 to vector<16x128xf32>
    %34 = arith.maximumf %32, %33 : vector<16x128xf32>
    %35 = arith.truncf %34 : vector<16x128xf32> to vector<16x128xbf16>
    %c0_24 = arith.constant 0 : index
    %c0_25 = arith.constant 0 : index
    %36 = vector.load %arg5[%c0_24, %c0_25] : memref<128x256xbf16, #tpu.memory_space<vmem>>, vector<128x256xbf16>
    %cst_26 = arith.constant dense<0.000000e+00> : vector<16x256xf32>
    %37 = tpu.matmul %35, %36, %cst_26 {dimension_numbers = #tpu.dot_dimension_numbers<[1], [0], [0], [1], [0, 0, 1, 1], [], []>} : vector<16x128xbf16>, vector<128x256xbf16>, vector<16x256xf32> -> vector<16x256xf32>
    %c0_27 = arith.constant 0 : index
    %c0_28 = arith.constant 0 : index
    %38 = vector.load %arg9[%c0_27, %c0_28] : memref<1x256xf32, #tpu.memory_space<vmem>>, vector<1x256xf32>
    %39 = vector.broadcast %38 : vector<1x256xf32> to vector<16x256xf32>
    %40 = arith.addf %37, %39 : vector<16x256xf32>
    %c0_29 = arith.constant 0 : index
    %c0_30 = arith.constant 0 : index
    %41 = vector.load %arg12[%c0_29, %c0_30] : memref<16x256xf32, #tpu.memory_space<vmem>>, vector<16x256xf32>
    tpu.vector_store %arg12[%c0_29, %c0_30], %40 {strides = array<i32>} : memref<16x256xf32, #tpu.memory_space<vmem>>, vector<16x256xf32>,
    %42 = vector.extract_strided_slice %40 {offsets = [0, 0], sizes = [16, 128], strides = [1, 1]} : vector<16x256xf32> to vector<16x128xf32>
    %43 = vector.extract_strided_slice %40 {offsets = [0, 128], sizes = [16, 128], strides = [1, 1]} : vector<16x256xf32> to vector<16x128xf32>
    %c0_31 = arith.constant 0 : index
    %c0_32 = arith.constant 0 : index
    %44 = vector.load %arg2[%c0_31, %c0_32] : memref<16x128xf32, #tpu.memory_space<vmem>>, vector<16x128xf32>
    %cst_33 = arith.constant 5.000000e-01 : f32
    %45 = vector.broadcast %cst_33 : f32 to vector<16x128xf32>
    %46 = arith.mulf %45, %43 : vector<16x128xf32>
    %47 = math.exp %46 : vector<16x128xf32>
    %48 = arith.mulf %44, %47 : vector<16x128xf32>
    %49 = arith.addf %42, %48 : vector<16x128xf32>
    %50 = arith.truncf %49 : vector<16x128xf32> to vector<16x128xbf16>
    %c0_34 = arith.constant 0 : index
    %c0_35 = arith.constant 0 : index
    %51 = vector.load %arg6[%c0_34, %c0_35] : memref<128x128xbf16, #tpu.memory_space<vmem>>, vector<128x128xbf16>
    %cst_36 = arith.constant dense<0.000000e+00> : vector<16x128xf32>
    %52 = tpu.matmul %50, %51, %cst_36 {dimension_numbers = #tpu.dot_dimension_numbers<[1], [0], [0], [1], [0, 0, 1, 1], [], []>} : vector<16x128xbf16>, vector<128x128xbf16>, vector<16x128xf32> -> vector<16x128xf32>
    %c4 = arith.constant 4 : index
    %c0_37 = arith.constant 0 : index
    %53 = vector.load %arg8[%c4, %c0_37] : memref<8x128xf32, #tpu.memory_space<vmem>>, vector<1x128xf32>
    %54 = vector.broadcast %53 : vector<1x128xf32> to vector<16x128xf32>
    %55 = arith.addf %52, %54 : vector<16x128xf32>
    %cst_38 = arith.constant 0.000000e+00 : f32
    %56 = vector.broadcast %cst_38 : f32 to vector<16x128xf32>
    %57 = arith.maximumf %55, %56 : vector<16x128xf32>
    %58 = arith.truncf %57 : vector<16x128xf32> to vector<16x128xbf16>
    %c3_39 = arith.constant 3 : index
    %c0_40 = arith.constant 0 : index
    %c0_41 = arith.constant 0 : index
    %59 = vector.load %arg4[%c3_39, %c0_40, %c0_41] : memref<5x128x128xbf16, #tpu.memory_space<vmem>>, vector<1x128x128xbf16>
    %60 = vector.shape_cast %59 : vector<1x128x128xbf16> to vector<128x128xbf16>
    %cst_42 = arith.constant dense<0.000000e+00> : vector<16x128xf32>
    %61 = tpu.matmul %58, %60, %cst_42 {dimension_numbers = #tpu.dot_dimension_numbers<[1], [0], [0], [1], [0, 0, 1, 1], [], []>} : vector<16x128xbf16>, vector<128x128xbf16>, vector<16x128xf32> -> vector<16x128xf32>
    %c5 = arith.constant 5 : index
    %c0_43 = arith.constant 0 : index
    %62 = vector.load %arg8[%c5, %c0_43] : memref<8x128xf32, #tpu.memory_space<vmem>>, vector<1x128xf32>
    %63 = vector.broadcast %62 : vector<1x128xf32> to vector<16x128xf32>
    %64 = arith.addf %61, %63 : vector<16x128xf32>
    %cst_44 = arith.constant 0.000000e+00 : f32
    %65 = vector.broadcast %cst_44 : f32 to vector<16x128xf32>
    %66 = arith.maximumf %64, %65 : vector<16x128xf32>
    %67 = arith.truncf %66 : vector<16x128xf32> to vector<16x128xbf16>
    %c4_45 = arith.constant 4 : index
    %c0_46 = arith.constant 0 : index
    %c0_47 = arith.constant 0 : index
    %68 = vector.load %arg4[%c4_45, %c0_46, %c0_47] : memref<5x128x128xbf16, #tpu.memory_space<vmem>>, vector<1x128x128xbf16>
    %69 = vector.shape_cast %68 : vector<1x128x128xbf16> to vector<128x128xbf16>
    %cst_48 = arith.constant dense<0.000000e+00> : vector<16x128xf32>
    %70 = tpu.matmul %67, %69, %cst_48 {dimension_numbers = #tpu.dot_dimension_numbers<[1], [0], [0], [1], [0, 0, 1, 1], [], []>} : vector<16x128xbf16>, vector<128x128xbf16>, vector<16x128xf32> -> vector<16x128xf32>
    %c6 = arith.constant 6 : index
    %c0_49 = arith.constant 0 : index
    %71 = vector.load %arg8[%c6, %c0_49] : memref<8x128xf32, #tpu.memory_space<vmem>>, vector<1x128xf32>
    %72 = vector.broadcast %71 : vector<1x128xf32> to vector<16x128xf32>
    %73 = arith.addf %70, %72 : vector<16x128xf32>
    %cst_50 = arith.constant 0.000000e+00 : f32
    %74 = vector.broadcast %cst_50 : f32 to vector<16x128xf32>
    %75 = arith.maximumf %73, %74 : vector<16x128xf32>
    %76 = arith.truncf %75 : vector<16x128xf32> to vector<16x128xbf16>
    %c0_51 = arith.constant 0 : index
    %c0_52 = arith.constant 0 : index
    %77 = vector.load %arg7[%c0_51, %c0_52] : memref<128x128xbf16, #tpu.memory_space<vmem>>, vector<128x128xbf16>
    %cst_53 = arith.constant dense<0.000000e+00> : vector<16x128xf32>
    %78 = tpu.matmul %76, %77, %cst_53 {dimension_numbers = #tpu.dot_dimension_numbers<[1], [0], [0], [1], [0, 0, 1, 1], [], []>} : vector<16x128xbf16>, vector<128x128xbf16>, vector<16x128xf32> -> vector<16x128xf32>
    %c0_54 = arith.constant 0 : index
    %c0_55 = arith.constant 0 : index
    %79 = vector.load %arg10[%c0_54, %c0_55] : memref<1x128xf32, #tpu.memory_space<vmem>>, vector<1x128xf32>
    %80 = vector.broadcast %79 : vector<1x128xf32> to vector<16x128xf32>
    %81 = arith.addf %78, %80 : vector<16x128xf32>
    %82 = arith.negf %81 : vector<16x128xf32>
    %83 = math.exp %82 : vector<16x128xf32>
    %cst_56 = arith.constant 1.000000e+00 : f32
    %84 = vector.broadcast %cst_56 : f32 to vector<16x128xf32>
    %85 = arith.addf %84, %83 : vector<16x128xf32>
    %86 = arith.divf %84, %85 : vector<16x128xf32>
    %c0_57 = arith.constant 0 : index
    %c0_58 = arith.constant 0 : index
    %87 = vector.load %arg11[%c0_57, %c0_58] : memref<16x128xf32, #tpu.memory_space<vmem>>, vector<16x128xf32>
    tpu.vector_store %arg11[%c0_57, %c0_58], %86 {strides = array<i32>} : memref<16x128xf32, #tpu.memory_space<vmem>>, vector<16x128xf32>,
    return
  }
  func.func @transform_0(%arg0: i32) -> (i32, i32) {
    %c0_i32 = arith.constant 0 : i32
    %c0_i32_0 = arith.constant 0 : i32
    return %arg0, %c0_i32 : i32, i32
  }
  func.func @transform_1(%arg0: i32) -> (i32, i32) {
    %c0_i32 = arith.constant 0 : i32
    %c0_i32_0 = arith.constant 0 : i32
    return %arg0, %c0_i32 : i32, i32
  }
  func.func @transform_2(%arg0: i32) -> (i32, i32) {
    %c0_i32 = arith.constant 0 : i32
    %c0_i32_0 = arith.constant 0 : i32
    %c0_i32_1 = arith.constant 0 : i32
    return %c0_i32, %c0_i32_0 : i32, i32
  }
  func.func @transform_3(%arg0: i32) -> (i32, i32, i32) {
    %c0_i32 = arith.constant 0 : i32
    %c0_i32_0 = arith.constant 0 : i32
    %c0_i32_1 = arith.constant 0 : i32
    %c0_i32_2 = arith.constant 0 : i32
    return %c0_i32, %c0_i32_0, %c0_i32_1 : i32, i32, i32
  }
  func.func @transform_4(%arg0: i32) -> (i32, i32) {
    %c0_i32 = arith.constant 0 : i32
    %c0_i32_0 = arith.constant 0 : i32
    %c0_i32_1 = arith.constant 0 : i32
    return %c0_i32, %c0_i32_0 : i32, i32
  }
  func.func @transform_5(%arg0: i32) -> (i32, i32) {
    %c0_i32 = arith.constant 0 : i32
    %c0_i32_0 = arith.constant 0 : i32
    %c0_i32_1 = arith.constant 0 : i32
    return %c0_i32, %c0_i32_0 : i32, i32
  }
  func.func @transform_6(%arg0: i32) -> (i32, i32) {
    %c0_i32 = arith.constant 0 : i32
    %c0_i32_0 = arith.constant 0 : i32
    %c0_i32_1 = arith.constant 0 : i32
    return %c0_i32, %c0_i32_0 : i32, i32
  }
  func.func @transform_7(%arg0: i32) -> (i32, i32) {
    %c0_i32 = arith.constant 0 : i32
    %c0_i32_0 = arith.constant 0 : i32
    %c0_i32_1 = arith.constant 0 : i32
    return %c0_i32, %c0_i32_0 : i32, i32
  }
  func.func @transform_8(%arg0: i32) -> (i32, i32) {
    %c0_i32 = arith.constant 0 : i32
    %c0_i32_0 = arith.constant 0 : i32
    %c0_i32_1 = arith.constant 0 : i32
    return %c0_i32, %c0_i32_0 : i32, i32
  }
  func.func @transform_9(%arg0: i32) -> (i32, i32) {
    %c0_i32 = arith.constant 0 : i32
    %c0_i32_0 = arith.constant 0 : i32
    %c0_i32_1 = arith.constant 0 : i32
    return %c0_i32, %c0_i32_0 : i32, i32
  }
  func.func @transform_10(%arg0: i32) -> (i32, i32) {
    %c0_i32 = arith.constant 0 : i32
    %c0_i32_0 = arith.constant 0 : i32
    return %arg0, %c0_i32 : i32, i32
  }
  func.func @transform_11(%arg0: i32) -> (i32, i32) {
    %c0_i32 = arith.constant 0 : i32
    %c0_i32_0 = arith.constant 0 : i32
    return %arg0, %c0_i32 : i32, i32
  }
}

</mosaic_0001>

<bundles_post_ra>
// kernel: _vae_forward_prepared.1
= control target key start
LH: loop header
LB: loop body
LE: loop exit
PB: predicated region body
PF: predicated region fallthrough
CT: control target
= control target key end

     0   :  { %17 = vsyncpa [#allocation3], 0  ;;  %s2710_s0 = inlined_call_operand.vmem [shape: bf16[32,128], index: 0, kind: input, shape index: {}]   ;;  %s2711_s1 = inlined_call_operand.vmem [shape: f32[32,128], index: 1, kind: input, shape index: {}]   ;;  %s2712_s2 = inlined_call_operand.hbm [shape: bf16[128,128], index: 2, kind: input, shape index: {}]   ;;  %s2713_s3 = inlined_call_operand.hbm [shape: bf16[5,128,128], index: 3, kind: input, shape index: {}]   ;;  %s2714_s4 = inlined_call_operand.vmem [shape: bf16[128,256], index: 4, kind: input, shape index: {}]   ;;  %s2715_s5 = inlined_call_operand.hbm [shape: bf16[128,128], index: 5, kind: input, shape index: {}]   ;;  %s2716_s6 = inlined_call_operand.hbm [shape: bf16[128,128], index: 6, kind: input, shape index: {}]   ;;  %s2717_s7 = inlined_call_operand.vmem [shape: f32[8,128], index: 7, kind: input, shape index: {}]   ;;  %s2718_s8 = inlined_call_operand.vmem [shape: f32[1,256], index: 8, kind: input, shape index: {}]   ;;  %s2719_s9 = inlined_call_operand.vmem [shape: f32[1,128], index: 9, kind: input, shape index: {}]   ;;  %s2720_s10 = inlined_call_operand.vmem [shape: f32[32,128], index: 10, kind: output, shape index: {0}]   ;;  %s2721_s11 = inlined_call_operand.vmem [shape: f32[32,256], index: 11, kind: output, shape index: {1}]  }
   0x1   :  { %18 = vsyncpa [#allocation5], 0 }
   0x2   :  { %19 = vsyncpa [#allocation8], 0  ;;  %s2426_s17 = smov 0  }
   0x3 LB: > { %s1730_s18 = sadd.s32 4294967295, %s2355_s17   ;;  %p1732_p0 = scmp.ge.s32.totalorder %s2355_s17, 1  ;;  %s2355_s17 = sphi %s2426_s17, %s25_s17  }
   0x4   : > { %p302_p1 = scmp.lt.s32.totalorder %s2355_s17, 3  ;;  %p2436_p2 = scmp.eq.s32.totalorder %s1730_s18, 0 }
   0x5   : > { %s2357_s21 = smov [#allocation4]   ;;  %s2358_s23 = smov [#allocation2]  }
   0x6   : > { %p2440_p3 = pnand %p1732_p0, %p302_p1  ;;  %s327_s22 = sshll.u32 %s2357_s21, 4  ;;  %s328_s22 = int_to_ptr.vmem [resolvable:$true] %s327_s22 }
   0x7   : > { %s314_s24 = sshll.u32 %s2358_s23, 4  ;;  %s2359_s26 = smov [#allocation6]   ;;  %s2446_s24 = int_to_ptr.vmem [resolvable:$true] %s314_s24 }
   0x8   : > { %p2094_p4 = pneg %p2440_p3  ;;  %s343_s27 = sshll.u32 %s2359_s26, 4  ;;  %s2454_s27 = int_to_ptr.vmem [resolvable:$true] %s343_s27 }
   0x9   : > { %s2360_s28 = smov [#allocation7]   ;;  %s2244_s30 = scalar_lea.vmem %s328_s22, 5120 }
   0xa   : > { %p2450_p5 = pnand %p2436_p2, %p2094_p4  ;;  %s2456_s29 = sshll.u32 %s2360_s28, 4  ;;  %s357_s29 = int_to_ptr.vmem [resolvable:$true] %s2456_s29 }
   0xb   : > { %p2245_p7 = scmp.ne.s32.totalorder %s328_s22, %s2244_s30  ;;  %p2252_p10 = scmp.lt.s32.totalorder %s328_s22, %s328_s22 }
   0xc   : > { %p2235_p6 = pneg %p2450_p5  ;;  %p2253_p11 = scmp.lt.s32.totalorder %s2244_s30, %s2244_s30 }
   0xe   : > { %p2247_p8 = pnand %p2245_p7, %p2235_p6  ;;  %p2254_p12 = por %p2253_p11, %p2252_p10 }
  0x10   : > { %p2248_p9 = pneg %p2247_p8 }
  0x12   : > { %p2255_p13 = pnand %p2254_p12, %p2248_p9 }
  0x14   : > { %2258 = shalt.err (!%p2255_p13)
}
  0x15   : > { %s2361_s12 = smov 64   ;;  %s2362_s13 = smov 4  }
  0x16   : > { %2100 = dma.hbm_to_vmem [thread:$0]  (!%p2450_p5), %s2713_s3, 5120, %s328_s22, [#allocation5], %s2361_s12, %s2361_s12, %s2362_s13  }
  0x17   : > { %s2270_s16 = scalar_lea.vmem %s2446_s24, 1024  ;;  %p2278_p7 = scmp.lt.s32.totalorder %s2446_s24, %s2446_s24 }
  0x18   : > { %p2271_p0 = scmp.ne.s32.totalorder %s2446_s24, %s2270_s16  ;;  %p2279_p8 = scmp.lt.s32.totalorder %s2270_s16, %s2270_s16 }
  0x1a   : > { %p2273_p1 = pnand %p2271_p0, %p2235_p6  ;;  %p2280_p9 = por %p2279_p8, %p2278_p7 }
  0x1c   : > { %p2274_p4 = pneg %p2273_p1 }
  0x1e   : > { %p2281_p10 = pnand %p2280_p9, %p2274_p4 }
  0x20   : > { %2284 = shalt.err (!%p2281_p10)
}
  0x21   : > { %2097 = dma.hbm_to_vmem [thread:$0]  (!%p2450_p5), %s2712_s2, 1024, %s2446_s24, [#allocation3], %s2361_s12, %s2361_s12, %s2362_s13  }
  0x22   : > { %s2296_s23 = scalar_lea.vmem %s2454_s27, 1024  ;;  %p2304_p0 = scmp.lt.s32.totalorder %s2454_s27, %s2454_s27 }
  0x23   : > { %p2297_p11 = scmp.ne.s32.totalorder %s2454_s27, %s2296_s23  ;;  %p2305_p1 = scmp.lt.s32.totalorder %s2296_s23, %s2296_s23 }
  0x25   : > { %p2299_p12 = pnand %p2297_p11, %p2235_p6  ;;  %p2306_p4 = por %p2305_p1, %p2304_p0 }
  0x27   : > { %p2300_p13 = pneg %p2299_p12 }
  0x29   : > { %p2307_p7 = pnand %p2306_p4, %p2300_p13 }
  0x2b   : > { %2310 = shalt.err (!%p2307_p7)
}
  0x2c   : > { %2103 = dma.hbm_to_vmem [thread:$0]  (!%p2450_p5), %s2715_s5, 1024, %s2454_s27, [#allocation5], %s2361_s12, %s2361_s12, %s2362_s13  }
  0x2d   : > { %s2322_s28 = scalar_lea.vmem %s357_s29, 1024  ;;  %p2330_p11 = scmp.lt.s32.totalorder %s357_s29, %s357_s29 }
  0x2e   : > { %p2323_p8 = scmp.ne.s32.totalorder %s357_s29, %s2322_s28  ;;  %p2331_p12 = scmp.lt.s32.totalorder %s2322_s28, %s2322_s28 }
  0x30   : > { %p2325_p9 = pnand %p2323_p8, %p2235_p6  ;;  %p2332_p13 = por %p2331_p12, %p2330_p11 }
  0x32   : > { %p2326_p10 = pneg %p2325_p9 }
  0x34   : > { %p2333_p0 = pnand %p2332_p13, %p2326_p10 }
  0x36   : > { %2336 = shalt.err (!%p2333_p0)
}
  0x37   : > { %2106 = dma.hbm_to_vmem [thread:$0]  (!%p2450_p5), %s2716_s6, 1024, %s357_s29, [#allocation8], %s2361_s12, %s2361_s12, %s2362_s13  }
  0x38   : > { %399 = sbr.rel (%p2440_p3) target bundleno = 1978 (0x7ba), region = 60 }
  0x3d   : > { %2342 = dma.done.wait (%p2436_p2), [#allocation3], 1024  }
  0x3e   : > { %2344 = vsyncadd (%p2436_p2), [#allocation3], 4294966272 }
  0x3f   : > { %2346 = dma.done.wait (%p2436_p2), [#allocation5], 6144  }
  0x40   : > { %2348 = vsyncadd (%p2436_p2), [#allocation5], 4294961152 }
  0x41   : > { %2350 = dma.done.wait (%p2436_p2), [#allocation8], 1024  }
  0x42   : > { %2352 = vsyncadd (%p2436_p2), [#allocation8], 4294966272  ;;  %s1743_s20 = sshll.u32 %s1730_s18, 1  ;;  %v2363_v0 = vmov 0.0   ;;  %vm2364_vm0 = vmmov 0   ;;  %v2132_v1 = vld [vmem:[#allocation2 + $0x38] sm:$0xff]  }
  0x43   : > { %1918 = vmatprep.subr.bf16.mxu0 %v2363_v0  ;;  %1934 = vmatprep.mubr.msk.bf16.mxu0 %vm2364_vm0, %v2363_v0  ;;  %p463_p3 = scmp.lt.s32.totalorder %s1743_s20, 3  ;;  %v2133_v2 = vld [vmem:[#allocation2 + $0x30] sm:$0xff]   ;;  %v2134_v3 = vld [vmem:[#allocation2 + $0x28] sm:$0xff]   ;;  %v2141_v4 = vld [vmem:[#allocation4 + $0x38] sm:$0xff]  }
  0x44   : > { %1938 = vmatprep.subr.bf16.mxu1 %v2363_v0  ;;  %1954 = vmatprep.mubr.msk.bf16.mxu1 %vm2364_vm0, %v2363_v0  ;;  %v2135_v5 = vld [vmem:[#allocation2 + $0x20] sm:$0xff]   ;;  %v2142_v6 = vld [vmem:[#allocation4 + $0x30] sm:$0xff]   ;;  %v2136_v7 = vld [vmem:[#allocation2 + $0x18] sm:$0xff]  }
  0x45   : > { %s2726_s20 = smov (!%p463_p3, %s1743_s20), 3  ;;  %1919 = vmatpush3.bf16.msra.mxu0 %v2132_v1  ;;  %1939 = vmatpush3.bf16.msra.mxu1 %v2141_v4  ;;  %v2143_v8 = vld [vmem:[#allocation4 + $0x28] sm:$0xff]   ;;  %v2137_v9 = vld [vmem:[#allocation2 + $0x10] sm:$0xff]   ;;  %v2144_v10 = vld [vmem:[#allocation4 + $0x20] sm:$0xff]  }
  0x46   : > { %1920 = vmatprep.subr.bf16.mxu0 %v2363_v0  ;;  %s1744_s18 = sshll.u32 %s2726_s20, 2  ;;  %1940 = vmatprep.subr.bf16.mxu1 %v2363_v0  ;;  %v2138_v11 = vld [vmem:[#allocation2 + $0x8] sm:$0xff]   ;;  %v2145_v12 = vld [vmem:[#allocation4 + $0x18] sm:$0xff]   ;;  %v2139_v13 = vld [vmem:[#allocation2] sm:$0xff]   ;;  %s1845_s26 = sshll.u32 %s2726_s20, 4 }
  0x47   : > { %s466_s27 = scalar_lea.vmem %s2710_s0, %s1744_s18  ;;  %v2146_v15 = vld [vmem:[#allocation4 + $0x10] sm:$0xff]   ;;  %v2147_v16 = vld [vmem:[#allocation4 + $0x8] sm:$0xff]   ;;  %v2148_v17 = vld [vmem:[#allocation4] sm:$0xff]   ;;  %s485_s30 = scalar_lea.vmem %s2721_s11, %s1845_s26 }
  0x48   : > { %v2140_v14 = vld [vmem:[%s466_s27] sm:$0xff]   ;;  %v2149_v18 = vld [vmem:[#allocation4 + $0x78] sm:$0xff]   ;;  %v2150_v19 = vld [vmem:[#allocation4 + $0x70] sm:$0xff]   ;;  %s1746_s14 = sshll.u32 %s2726_s20, 3 }
  0x49   : > { %1921 = vmatpush3.bf16.msra.mxu0 %v2133_v2  ;;  %1941 = vmatpush3.bf16.msra.mxu1 %v2142_v6  ;;  %v2151_v20 = vld [vmem:[#allocation4 + $0x68] sm:$0xff]   ;;  %v2152_v21 = vld [vmem:[#allocation4 + $0x60] sm:$0xff]   ;;  %v2153_v22 = vld [vmem:[#allocation4 + $0x58] sm:$0xff]   ;;  %s472_s25 = scalar_lea.vmem %s2711_s1, %s1746_s14  ;;  %s478_s24 = scalar_lea.vmem %s2720_s10, %s1746_s14 }
  0x4a   : > { %1922 = vmatprep.subr.bf16.mxu0 %v2363_v0  ;;  %1942 = vmatprep.subr.bf16.mxu1 %v2363_v0  ;;  %v1752_v23 = vld [vmem:[%s2717_s7] ss:$0 sm:$0xff]  ;;  %v2154_v33 = vld [vmem:[#allocation4 + $0x50] sm:$0xff]   ;;  %v2155_v34 = vld [vmem:[#allocation4 + $0x48] sm:$0xff]  }
  0x4b   : > { %v2156_v35 = vld [vmem:[#allocation4 + $0x40] sm:$0xff]   ;;  %v2157_v36 = vld [vmem:[#allocation4 + $0xb8] sm:$0xff]   ;;  %v2158_v37 = vld [vmem:[#allocation4 + $0xb0] sm:$0xff]  }
  0x4c   : > { %v2159_v38 = vld [vmem:[#allocation4 + $0xa8] sm:$0xff]   ;;  %v2160_v39 = vld [vmem:[#allocation4 + $0xa0] sm:$0xff]   ;;  %v2161_v40 = vld [vmem:[#allocation4 + $0x98] sm:$0xff]  }
  0x4d   : > { %1923 = vmatpush3.bf16.msra.mxu0 %v2134_v3  ;;  %1943 = vmatpush3.bf16.msra.mxu1 %v2143_v8  ;;  %v1762_v41 = vld [vmem:[%s2717_s7 + $0x1] ss:$0 sm:$0xff]  ;;  %v2162_v51 = vld [vmem:[#allocation4 + $0x90] sm:$0xff]   ;;  %v2163_v52 = vld [vmem:[#allocation4 + $0x88] sm:$0xff]  }
  0x4e   : > { %1924 = vmatprep.subr.bf16.mxu0 %v2363_v0  ;;  %1944 = vmatprep.subr.bf16.mxu1 %v2363_v0  ;;  %v2164_v53 = vld [vmem:[#allocation4 + $0x80] sm:$0xff]   ;;  %v2165_v54 = vld [vmem:[%s2714_s4 + $0x70] ss:$8 sps:$4 sm:$0xff]   ;;  %v2167_v55 = vld [vmem:[%s2714_s4 + $0x74] ss:$8 sps:$4 sm:$0xff]  }
  0x4f   : > { %v2170_v56 = vld [vmem:[%s2714_s4 + $0x64] ss:$8 sps:$4 sm:$0xff]   ;;  %v2168_v57 = vld [vmem:[%s2714_s4 + $0x60] ss:$8 sps:$4 sm:$0xff]   ;;  %v2173_v58 = vld [vmem:[%s2714_s4 + $0x54] ss:$8 sps:$4 sm:$0xff]  }
  0x50   : > { %v2171_v59 = vld [vmem:[%s2714_s4 + $0x50] ss:$8 sps:$4 sm:$0xff]   ;;  %v2176_v60 = vld [vmem:[%s2714_s4 + $0x44] ss:$8 sps:$4 sm:$0xff]   ;;  %v2174_v61 = vld [vmem:[%s2714_s4 + $0x40] ss:$8 sps:$4 sm:$0xff]  }
  0x51   : > { %1925 = vmatpush3.bf16.msra.mxu0 %v2135_v5  ;;  %1945 = vmatpush3.bf16.msra.mxu1 %v2144_v10  ;;  %v2179_v62 = vld [vmem:[%s2714_s4 + $0x34] ss:$8 sps:$4 sm:$0xff]   ;;  %v2177_v63 = vld [vmem:[%s2714_s4 + $0x30] ss:$8 sps:$4 sm:$0xff]   ;;  %v2182_v1 = vld [vmem:[%s2714_s4 + $0x24] ss:$8 sps:$4 sm:$0xff]  }
  0x52   : > { %1926 = vmatprep.subr.bf16.mxu0 %v2363_v0  ;;  %1946 = vmatprep.subr.bf16.mxu1 %v2363_v0  ;;  %v2180_v2 = vld [vmem:[%s2714_s4 + $0x20] ss:$8 sps:$4 sm:$0xff]  }
  0x53   : > { %v1771_v3 = vld [vmem:[%s2717_s7 + $0x2] ss:$0 sm:$0xff] }
  0x55   : > { %1927 = vmatpush3.bf16.msra.mxu0 %v2136_v7  ;;  %1947 = vmatpush3.bf16.msra.mxu1 %v2145_v12 }
  0x56   : > { %1928 = vmatprep.subr.bf16.mxu0 %v2363_v0  ;;  %1948 = vmatprep.subr.bf16.mxu1 %v2363_v0 }
  0x59   : > { %1929 = vmatpush3.bf16.msra.mxu0 %v2137_v9  ;;  %1949 = vmatpush3.bf16.msra.mxu1 %v2146_v15  ;;  %v2188_v15 = vld [vmem:[%s2714_s4 + $0x4] ss:$8 sps:$4 sm:$0xff]  }
  0x5a   : > { %1930 = vmatprep.subr.bf16.mxu0 %v2363_v0  ;;  %1950 = vmatprep.subr.bf16.mxu1 %v2363_v0 }
  0x5d   : > { %1931 = vmatpush3.bf16.msra.mxu0 %v2138_v11  ;;  %1951 = vmatpush3.bf16.msra.mxu1 %v2147_v16  ;;  %v2186_v16 = vld [vmem:[%s2714_s4] ss:$8 sps:$4 sm:$0xff]  }
  0x5e   : > { %1932 = vmatprep.subr.bf16.mxu0 %v2363_v0  ;;  %1952 = vmatprep.subr.bf16.mxu1 %v2363_v0 }
  0x61   : > { %1933 = vmatpush3.bf16.msra.mxu0 %v2139_v13  ;;  %1953 = vmatpush3.bf16.msra.mxu1 %v2148_v17  ;;  %v2185_v13 = vld [vmem:[%s2714_s4 + $0x14] ss:$8 sps:$4 sm:$0xff]   ;;  %v2365_v17 = vmov 0  }
  0x62   : > { %1958 = vmatprep.subr.bf16.mxu0 %v2363_v0  ;;  %1978 = vmatprep.subr.bf16.mxu1 %v2363_v0 }
  0x64   : > { %1935 = vmatmul.mubr.bf16.vlgmr.msra.gmra.mxu0 %v2140_v14  ;;  %v2183_v14 = vld [vmem:[%s2714_s4 + $0x10] ss:$8 sps:$4 sm:$0xff]  }
  0x65   : > { %1974 = vmatprep.mubr.msk.bf16.mxu0 %vm2364_vm0, %v2363_v0  ;;  %1959 = vmatpush3.bf16.msra.mxu0 %v2149_v18  ;;  %v1780_v18 = vld [vmem:[%s2717_s7 + $0x3] ss:$0 sm:$0xff] }
  0x66   : > { %1960 = vmatprep.subr.bf16.mxu0 %v2363_v0 }
  0x69   : > { %1961 = vmatpush3.bf16.msra.mxu0 %v2150_v19 }
  0x6a   : > { %1962 = vmatprep.subr.bf16.mxu0 %v2363_v0 }
  0x6d   : > { %1963 = vmatpush3.bf16.msra.mxu0 %v2151_v20 }
  0x6e   : > { %1964 = vmatprep.subr.bf16.mxu0 %v2363_v0 }
  0x71   : > { %1965 = vmatpush3.bf16.msra.mxu0 %v2152_v21 }
  0x72   : > { %1966 = vmatprep.subr.bf16.mxu0 %v2363_v0 }
  0x75   : > { %1967 = vmatpush3.bf16.msra.mxu0 %v2153_v22 }
  0x76   : > { %1968 = vmatprep.subr.bf16.mxu0 %v2363_v0 }
  0x79   : > { %1969 = vmatpush3.bf16.msra.mxu0 %v2154_v33  ;;  %v2194_v33 = vld [vmem:[#allocation6 + $0x10] sm:$0xff]  }
  0x7a   : > { %1970 = vmatprep.subr.bf16.mxu0 %v2363_v0 }
  0x7d   : > { %1971 = vmatpush3.bf16.msra.mxu0 %v2155_v34  ;;  %v2195_v34 = vld [vmem:[#allocation6 + $0x8] sm:$0xff]  }
  0x7e   : > { %1972 = vmatprep.subr.bf16.mxu0 %v2363_v0 }
  0x81   : > { %1973 = vmatpush3.bf16.msra.mxu0 %v2156_v35  ;;  %v2196_v35 = vld [vmem:[#allocation6] sm:$0xff]  }
  0x82   : > { %1058 = vmatprep.subr.bf16.mxu0 %v2167_v55 }
 0x124   : > { %v599_v24 = vpop.f32.mrf.mxu0 }
 0x125   : > { %v600_v26 = vadd.f32 %v1752_v23, %v599_v24 }
 0x126   : > { %v1936_v25 = vpop.f32.mrf.mxu0 }
 0x127   : > { %v606_v30 = vmax.f32 %v600_v26, 0.0 }
 0x128   : > { %v602_v27 = vpop.f32.mrf.mxu0 }
 0x129   : > { %v603_v28 = vadd.f32 %v1752_v23, %v602_v27 }
 0x12a   : > { %v1937_v29 = vpop.f32.mrf.mxu0 }
 0x12b   : > { %v607_v31 = vmax.f32 %v603_v28, 0.0  ;;  %v2189_v28 = vld [vmem:[#allocation6 + $0x38] sm:$0xff]   ;;  %v2190_v29 = vld [vmem:[#allocation6 + $0x30] sm:$0xff]  }
 0x12d   : > { %v608_v32 = vpack.c.bf16 %v607_v31, %v606_v30  ;;  %v2191_v30 = vld [vmem:[#allocation6 + $0x28] sm:$0xff]   ;;  %v2192_v31 = vld [vmem:[#allocation6 + $0x20] sm:$0xff]  }
 0x12f   : > { %1955 = vmatmul.mubr.bf16.vlgmr.msra.gmra.mxu1 %v608_v32  ;;  %v2193_v32 = vld [vmem:[#allocation6 + $0x18] sm:$0xff]  }
 0x130   : > { %1994 = vmatprep.mubr.msk.bf16.mxu1 %vm2364_vm0, %v2363_v0  ;;  %1979 = vmatpush3.bf16.msra.mxu1 %v2157_v36  ;;  %v2197_v36 = vld [vmem:[#allocation4 + $0xf8] sm:$0xff]  }
 0x131   : > { %1980 = vmatprep.subr.bf16.mxu1 %v2363_v0 }
 0x134   : > { %1981 = vmatpush3.bf16.msra.mxu1 %v2158_v37  ;;  %v2198_v37 = vld [vmem:[#allocation4 + $0xf0] sm:$0xff]  }
 0x135   : > { %1982 = vmatprep.subr.bf16.mxu1 %v2363_v0 }
 0x138   : > { %1983 = vmatpush3.bf16.msra.mxu1 %v2159_v38  ;;  %v2199_v38 = vld [vmem:[#allocation4 + $0xe8] sm:$0xff]  }
 0x139   : > { %1984 = vmatprep.subr.bf16.mxu1 %v2363_v0 }
 0x13c   : > { %1985 = vmatpush3.bf16.msra.mxu1 %v2160_v39  ;;  %v2200_v39 = vld [vmem:[#allocation4 + $0xe0] sm:$0xff]  }
 0x13d   : > { %1986 = vmatprep.subr.bf16.mxu1 %v2363_v0 }
 0x140   : > { %1987 = vmatpush3.bf16.msra.mxu1 %v2161_v40  ;;  %v2201_v40 = vld [vmem:[#allocation4 + $0xd8] sm:$0xff]  }
 0x141   : > { %1988 = vmatprep.subr.bf16.mxu1 %v2363_v0 }
 0x144   : > { %1989 = vmatpush3.bf16.msra.mxu1 %v2162_v51 }
 0x145   : > { %1990 = vmatprep.subr.bf16.mxu1 %v2363_v0 }
 0x148   : > { %1991 = vmatpush3.bf16.msra.mxu1 %v2163_v52 }
 0x149   : > { %1992 = vmatprep.subr.bf16.mxu1 %v2363_v0 }
 0x14c   : > { %1993 = vmatpush3.bf16.msra.mxu1 %v2164_v53 }
 0x14d   : > { %1998 = vmatprep.subr.bf16.mxu1 %v2363_v0 }
 0x1ef   : > { %v712_v42 = vpop.f32.mrf.mxu1 }
 0x1f0   : > { %v713_v44 = vadd.f32 %v1762_v41, %v712_v42 }
 0x1f1   : > { %v1956_v43 = vpop.f32.mrf.mxu1 }
 0x1f2   : > { %v719_v48 = vmax.f32 %v713_v44, 0.0  ;;  %v966_v44 = vld [vmem:[%s2718_s8] sm:$0x3] }
 0x1f3   : > { %v715_v45 = vpop.f32.mrf.mxu1 }
 0x1f4   : > { %v716_v46 = vadd.f32 %v1762_v41, %v715_v45  ;;  %v968_v41 = vlaneseq }
 0x1f5   : > { %v1957_v47 = vpop.f32.mrf.mxu1 }
 0x1f6   : > { %v720_v49 = vmax.f32 %v716_v46, 0.0  ;;  %v969_v42 = vshrl.u32 %v968_v41, 7 }
 0x1f8   : > { %v721_v50 = vpack.c.bf16 %v720_v49, %v719_v48  ;;  %v970_v43 = vsub.s32 0, %v969_v42  ;;  %v974_v45 = vsub.s32 1, %v969_v42  ;;  %v2218_v42 = vld [vmem:[#allocation7 + $0x10] sm:$0xff]  }
 0x1fa   : > { %1975 = vmatmul.mubr.bf16.vlgmr.msra.gmra.mxu0 %v721_v50  ;;  %v971_v46 = vrot.slane %v966_v44, %v970_v43  ;;  %v975_v47 = vrot.slane %v966_v44, %v974_v45  ;;  %v2219_v43 = vld [vmem:[#allocation7 + $0x8] sm:$0xff]   ;;  %v2220_v44 = vld [vmem:[#allocation7] sm:$0xff]  }
 0x1fb   : > { %1059 = vmatpush1.bf16.msra.mxu0 %v2165_v54  ;;  %1090 = vmatprep.mubr.bf16.mxu0 %v2365_v17  ;;  %v1823_v45 = vld [vmem:[%s2717_s7 + $0x6] ss:$0 sm:$0xff] }
 0x1fc   : > { %1060 = vmatprep.subr.bf16.mxu0 %v2170_v56 }
 0x1ff   : > { %1061 = vmatpush1.bf16.msra.mxu0 %v2168_v57 }
 0x200   : > { %1062 = vmatprep.subr.bf16.mxu0 %v2173_v58 }
 0x203   : > { %1063 = vmatpush1.bf16.msra.mxu0 %v2171_v59 }
 0x204   : > { %1064 = vmatprep.subr.bf16.mxu0 %v2176_v60 }
 0x207   : > { %1065 = vmatpush1.bf16.msra.mxu0 %v2174_v61  ;;  %v1105_v61 = vld [vmem:[%s472_s25] sm:$0xff] }
 0x208   : > { %1066 = vmatprep.subr.bf16.mxu0 %v2179_v62  ;;  %v1106_v62 = vld [vmem:[%s472_s25 + $0x8] sm:$0xff] }
 0x20b   : > { %1067 = vmatpush1.bf16.msra.mxu0 %v2177_v63 }
 0x20c   : > { %1068 = vmatprep.subr.bf16.mxu0 %v2182_v1 }
 0x20f   : > { %1069 = vmatpush1.bf16.msra.mxu0 %v2180_v2 }
 0x210   : > { %1070 = vmatprep.subr.bf16.mxu0 %v2185_v13  ;;  %v2209_v13 = vld [vmem:[#allocation4 + $0x118] sm:$0xff]  }
 0x213   : > { %1071 = vmatpush1.bf16.msra.mxu0 %v2183_v14  ;;  %v1805_v14 = vld [vmem:[%s2717_s7 + $0x4] ss:$0 sm:$0xff] }
 0x214   : > { %1072 = vmatprep.subr.bf16.mxu0 %v2188_v15 }
 0x217   : > { %1073 = vmatpush1.bf16.msra.mxu0 %v2186_v16 }
 0x218   : > { %2018 = vmatprep.subr.bf16.mxu0 %v2363_v0 }
 0x2ba   : > { %v826_v4 = vpop.f32.mrf.mxu0 }
 0x2bb   : > { %v827_v6 = vadd.f32 %v1771_v3, %v826_v4 }
 0x2bc   : > { %v1976_v5 = vpop.f32.mrf.mxu0 }
 0x2bd   : > { %v833_v10 = vmax.f32 %v827_v6, 0.0  ;;  %v2202_v6 = vld [vmem:[#allocation4 + $0xd0] sm:$0xff]  }
 0x2be   : > { %v829_v7 = vpop.f32.mrf.mxu0 }
 0x2bf   : > { %v830_v8 = vadd.f32 %v1771_v3, %v829_v7  ;;  %v2203_v7 = vld [vmem:[#allocation4 + $0xc8] sm:$0xff]  }
 0x2c0   : > { %v1977_v9 = vpop.f32.mrf.mxu0 }
 0x2c1   : > { %v834_v11 = vmax.f32 %v830_v8, 0.0  ;;  %v2204_v8 = vld [vmem:[#allocation4 + $0xc0] sm:$0xff]   ;;  %v2205_v9 = vld [vmem:[#allocation4 + $0x138] sm:$0xff]  }
 0x2c3   : > { %v835_v12 = vpack.c.bf16 %v834_v11, %v833_v10  ;;  %v2206_v10 = vld [vmem:[#allocation4 + $0x130] sm:$0xff]   ;;  %v2207_v11 = vld [vmem:[#allocation4 + $0x128] sm:$0xff]  }
 0x2c5   : > { %1995 = vmatmul.mubr.bf16.vlgmr.msra.gmra.mxu1 %v835_v12  ;;  %v2208_v12 = vld [vmem:[#allocation4 + $0x120] sm:$0xff]  }
 0x2c6   : > { %2014 = vmatprep.mubr.msk.bf16.mxu1 %vm2364_vm0, %v2363_v0  ;;  %1999 = vmatpush3.bf16.msra.mxu1 %v2189_v28  ;;  %v2214_v28 = vld [vmem:[#allocation7 + $0x30] sm:$0xff]  }
 0x2c7   : > { %2000 = vmatprep.subr.bf16.mxu1 %v2363_v0 }
 0x2ca   : > { %2001 = vmatpush3.bf16.msra.mxu1 %v2190_v29  ;;  %v2215_v29 = vld [vmem:[#allocation7 + $0x28] sm:$0xff]  }
 0x2cb   : > { %2002 = vmatprep.subr.bf16.mxu1 %v2363_v0 }
 0x2ce   : > { %2003 = vmatpush3.bf16.msra.mxu1 %v2191_v30  ;;  %v2216_v30 = vld [vmem:[#allocation7 + $0x20] sm:$0xff]  }
 0x2cf   : > { %2004 = vmatprep.subr.bf16.mxu1 %v2363_v0 }
 0x2d2   : > { %2005 = vmatpush3.bf16.msra.mxu1 %v2192_v31  ;;  %v2217_v31 = vld [vmem:[#allocation7 + $0x18] sm:$0xff]  }
 0x2d3   : > { %2006 = vmatprep.subr.bf16.mxu1 %v2363_v0 }
 0x2d6   : > { %2007 = vmatpush3.bf16.msra.mxu1 %v2193_v32  ;;  %v1814_v32 = vld [vmem:[%s2717_s7 + $0x5] ss:$0 sm:$0xff] }
 0x2d7   : > { %2008 = vmatprep.subr.bf16.mxu1 %v2363_v0 }
 0x2da   : > { %2009 = vmatpush3.bf16.msra.mxu1 %v2194_v33 }
 0x2db   : > { %2010 = vmatprep.subr.bf16.mxu1 %v2363_v0 }
 0x2de   : > { %2011 = vmatpush3.bf16.msra.mxu1 %v2195_v34 }
 0x2df   : > { %2012 = vmatprep.subr.bf16.mxu1 %v2363_v0 }
 0x2e2   : > { %2013 = vmatpush3.bf16.msra.mxu1 %v2196_v35 }
 0x2e3   : > { %2038 = vmatprep.subr.bf16.mxu1 %v2363_v0 }
 0x385   : > { %v940_v19 = vpop.f32.mrf.mxu1 }
 0x386   : > { %v941_v21 = vadd.f32 %v1780_v18, %v940_v19 }
 0x387   : > { %v1996_v20 = vpop.f32.mrf.mxu1 }
 0x388   : > { %v947_v25 = vmax.f32 %v941_v21, 0.0 }
 0x389   : > { %v943_v22 = vpop.f32.mrf.mxu1 }
 0x38a   : > { %v944_v23 = vadd.f32 %v1780_v18, %v943_v22 }
 0x38b   : > { %v1997_v24 = vpop.f32.mrf.mxu1 }
 0x38c   : > { %v948_v26 = vmax.f32 %v944_v23, 0.0  ;;  %v2210_v24 = vld [vmem:[#allocation4 + $0x110] sm:$0xff]  }
 0x38e   : > { %v949_v27 = vpack.c.bf16 %v948_v26, %v947_v25  ;;  %v2211_v25 = vld [vmem:[#allocation4 + $0x108] sm:$0xff]   ;;  %v2212_v26 = vld [vmem:[#allocation4 + $0x100] sm:$0xff]  }
 0x390   : > { %1091 = vmatmul.mubr.bf16.vlgmr.msra.gmra.mxu0 %v949_v27  ;;  %v2213_v27 = vld [vmem:[#allocation7 + $0x38] sm:$0xff]  }
 0x391   : > { %2034 = vmatprep.mubr.msk.bf16.mxu0 %vm2364_vm0, %v2363_v0  ;;  %2019 = vmatpush3.bf16.msra.mxu0 %v2197_v36 }
 0x392   : > { %2020 = vmatprep.subr.bf16.mxu0 %v2363_v0 }
 0x395   : > { %2021 = vmatpush3.bf16.msra.mxu0 %v2198_v37 }
 0x396   : > { %2022 = vmatprep.subr.bf16.mxu0 %v2363_v0 }
 0x399   : > { %2023 = vmatpush3.bf16.msra.mxu0 %v2199_v38 }
 0x39a   : > { %2024 = vmatprep.subr.bf16.mxu0 %v2363_v0 }
 0x39d   : > { %2025 = vmatpush3.bf16.msra.mxu0 %v2200_v39 }
 0x39e   : > { %2026 = vmatprep.subr.bf16.mxu0 %v2363_v0 }
 0x3a1   : > { %2027 = vmatpush3.bf16.msra.mxu0 %v2201_v40 }
 0x3a2   : > { %2028 = vmatprep.subr.bf16.mxu0 %v2363_v0 }
 0x3a5   : > { %2029 = vmatpush3.bf16.msra.mxu0 %v2202_v6 }
 0x3a6   : > { %2030 = vmatprep.subr.bf16.mxu0 %v2363_v0 }
 0x3a9   : > { %2031 = vmatpush3.bf16.msra.mxu0 %v2203_v7 }
 0x3aa   : > { %2032 = vmatprep.subr.bf16.mxu0 %v2363_v0 }
 0x3ad   : > { %2033 = vmatpush3.bf16.msra.mxu0 %v2204_v8 }
 0x3ae   : > { %2058 = vmatprep.subr.bf16.mxu0 %v2363_v0 }
 0x450   : > { %v1092_v48 = vpop.f32.mrf.mxu0 }
 0x451   : > { %v1093_v49 = vadd.f32 %v1092_v48, %v971_v46 }
 0x452   : > { %v1094_v50 = vpop.f32.mrf.mxu0 }
 0x453   : > { %1101 = vst [vmem:[%s485_s30] sm:$0xff] %v1093_v49  ;;  %v1095_v51 = vadd.f32 %v1094_v50, %v975_v47 }
 0x454   : > { %v1096_v52 = vpop.f32.mrf.mxu0 }
 0x455   : > { %1102 = vst [vmem:[%s485_s30 + $0x8] sm:$0xff] %v1095_v51  ;;  %v1107_v53 = vmul.f32 0.5, %v1095_v51  ;;  %v1097_v54 = vadd.f32 %v1096_v52, %v971_v46 }
 0x456   : > { %v1098_v55 = vpop.f32.mrf.mxu0 }
 0x457   : > { %v1109_v56 = vmul.f32 1.442695, %v1107_v53  ;;  %1103 = vst [vmem:[%s485_s30 + $0x10] sm:$0xff] %v1097_v54  ;;  %v1099_v57 = vadd.f32 %v1098_v55, %v975_v47 }
 0x459   : > { %2221 = vpow2.f32 %v1109_v56  ;;  %1104 = vst [vmem:[%s485_s30 + $0x18] sm:$0xff] %v1099_v57  ;;  %v1108_v58 = vmul.f32 0.5, %v1099_v57 }
 0x45b   : > { %v1111_v59 = vmul.f32 1.442695, %v1108_v58 }
 0x45d   : > { %2223 = vpow2.f32 %v1111_v59 }
 0x466   : > { %v2222_v60 = vpop.eup %2221 }
 0x467   : > { %v1113_v63 = vmul.f32 %v2222_v60, %v1105_v61 }
 0x469   : > { %v1115_v3 = vadd.f32 %v1113_v63, %v1093_v49 }
 0x46a   : > { %v2224_v1 = vpop.eup %2223 }
 0x46b   : > { %v1114_v2 = vmul.f32 %v2224_v1, %v1106_v62 }
 0x46d   : > { %v1116_v4 = vadd.f32 %v1114_v2, %v1097_v54 }
 0x46f   : > { %v1117_v5 = vpack.c.bf16 %v1116_v4, %v1115_v3 }
 0x471   : > { %2015 = vmatmul.mubr.bf16.vlgmr.msra.gmra.mxu1 %v1117_v5 }
 0x472   : > { %2054 = vmatprep.mubr.msk.bf16.mxu1 %vm2364_vm0, %v2363_v0  ;;  %2039 = vmatpush3.bf16.msra.mxu1 %v2205_v9 }
 0x473   : > { %2040 = vmatprep.subr.bf16.mxu1 %v2363_v0 }
 0x476   : > { %2041 = vmatpush3.bf16.msra.mxu1 %v2206_v10 }
 0x477   : > { %2042 = vmatprep.subr.bf16.mxu1 %v2363_v0 }
 0x47a   : > { %2043 = vmatpush3.bf16.msra.mxu1 %v2207_v11 }
 0x47b   : > { %2044 = vmatprep.subr.bf16.mxu1 %v2363_v0 }
 0x47e   : > { %2045 = vmatpush3.bf16.msra.mxu1 %v2208_v12 }
 0x47f   : > { %2046 = vmatprep.subr.bf16.mxu1 %v2363_v0 }
 0x482   : > { %2047 = vmatpush3.bf16.msra.mxu1 %v2209_v13 }
 0x483   : > { %2048 = vmatprep.subr.bf16.mxu1 %v2363_v0 }
 0x486   : > { %2049 = vmatpush3.bf16.msra.mxu1 %v2210_v24 }
 0x487   : > { %2050 = vmatprep.subr.bf16.mxu1 %v2363_v0 }
 0x48a   : > { %2051 = vmatpush3.bf16.msra.mxu1 %v2211_v25 }
 0x48b   : > { %2052 = vmatprep.subr.bf16.mxu1 %v2363_v0 }
 0x48e   : > { %2053 = vmatpush3.bf16.msra.mxu1 %v2212_v26 }
 0x531   : > { %v1221_v15 = vpop.f32.mrf.mxu1 }
 0x532   : > { %v1222_v17 = vadd.f32 %v1805_v14, %v1221_v15 }
 0x533   : > { %v2016_v16 = vpop.f32.mrf.mxu1 }
 0x534   : > { %v1228_v21 = vmax.f32 %v1222_v17, 0.0 }
 0x535   : > { %v1224_v18 = vpop.f32.mrf.mxu1 }
 0x536   : > { %v1225_v19 = vadd.f32 %v1805_v14, %v1224_v18 }
 0x537   : > { %v2017_v20 = vpop.f32.mrf.mxu1 }
 0x538   : > { %v1229_v22 = vmax.f32 %v1225_v19, 0.0 }
 0x53a   : > { %v1230_v23 = vpack.c.bf16 %v1229_v22, %v1228_v21 }
 0x53c   : > { %2035 = vmatmul.mubr.bf16.vlgmr.msra.gmra.mxu0 %v1230_v23 }
 0x53d   : > { %2074 = vmatprep.mubr.msk.bf16.mxu0 %vm2364_vm0, %v2363_v0  ;;  %2059 = vmatpush3.bf16.msra.mxu0 %v2213_v27 }
 0x53e   : > { %2060 = vmatprep.subr.bf16.mxu0 %v2363_v0 }
 0x541   : > { %2061 = vmatpush3.bf16.msra.mxu0 %v2214_v28 }
 0x542   : > { %2062 = vmatprep.subr.bf16.mxu0 %v2363_v0 }
 0x545   : > { %2063 = vmatpush3.bf16.msra.mxu0 %v2215_v29 }
 0x546   : > { %2064 = vmatprep.subr.bf16.mxu0 %v2363_v0 }
 0x549   : > { %2065 = vmatpush3.bf16.msra.mxu0 %v2216_v30 }
 0x54a   : > { %2066 = vmatprep.subr.bf16.mxu0 %v2363_v0 }
 0x54d   : > { %2067 = vmatpush3.bf16.msra.mxu0 %v2217_v31 }
 0x54e   : > { %2068 = vmatprep.subr.bf16.mxu0 %v2363_v0 }
 0x551   : > { %2069 = vmatpush3.bf16.msra.mxu0 %v2218_v42 }
 0x552   : > { %2070 = vmatprep.subr.bf16.mxu0 %v2363_v0 }
 0x555   : > { %2071 = vmatpush3.bf16.msra.mxu0 %v2219_v43 }
 0x556   : > { %2072 = vmatprep.subr.bf16.mxu0 %v2363_v0  ;;  %v1832_v0 = vld [vmem:[%s2719_s9] ss:$0 sm:$0xff] }
 0x559   : > { %2073 = vmatpush3.bf16.msra.mxu0 %v2220_v44 }
 0x5fc   : > { %v1335_v33 = vpop.f32.mrf.mxu0 }
 0x5fd   : > { %v1336_v35 = vadd.f32 %v1814_v32, %v1335_v33 }
 0x5fe   : > { %v2036_v34 = vpop.f32.mrf.mxu0 }
 0x5ff   : > { %v1342_v39 = vmax.f32 %v1336_v35, 0.0 }
 0x600   : > { %v1338_v36 = vpop.f32.mrf.mxu0 }
 0x601   : > { %v1339_v37 = vadd.f32 %v1814_v32, %v1338_v36 }
 0x602   : > { %v2037_v38 = vpop.f32.mrf.mxu0 }
 0x603   : > { %v1343_v40 = vmax.f32 %v1339_v37, 0.0 }
 0x605   : > { %v1344_v41 = vpack.c.bf16 %v1343_v40, %v1342_v39 }
 0x607   : > { %2055 = vmatmul.mubr.bf16.vlgmr.msra.gmra.mxu1 %v1344_v41 }
 0x6c7   : > { %v1449_v46 = vpop.f32.mrf.mxu1 }
 0x6c8   : > { %v1450_v48 = vadd.f32 %v1823_v45, %v1449_v46 }
 0x6c9   : > { %v2056_v47 = vpop.f32.mrf.mxu1 }
 0x6ca   : > { %v1456_v52 = vmax.f32 %v1450_v48, 0.0 }
 0x6cb   : > { %v1452_v49 = vpop.f32.mrf.mxu1 }
 0x6cc   : > { %v1453_v50 = vadd.f32 %v1823_v45, %v1452_v49 }
 0x6cd   : > { %v2057_v51 = vpop.f32.mrf.mxu1 }
 0x6ce   : > { %v1457_v53 = vmax.f32 %v1453_v50, 0.0 }
 0x6d0   : > { %v1458_v54 = vpack.c.bf16 %v1457_v53, %v1456_v52 }
 0x6d2   : > { %2075 = vmatmul.mubr.bf16.vlgmr.msra.gmra.mxu0 %v1458_v54 }
 0x792   : > { %v1564_v55 = vpop.f32.mrf.mxu0 }
 0x793   : > { %v1565_v56 = vadd.f32 %v1832_v0, %v1564_v55 }
 0x794   : > { %v2076_v57 = vpop.f32.mrf.mxu0 }
 0x795   : > { %v1841_v58 = vmul.f32 -1.442695, %v1565_v56 }
 0x796   : > { %v1567_v59 = vpop.f32.mrf.mxu0 }
 0x797   : > { %2225 = vpow2.f32 %v1841_v58  ;;  %v1568_v60 = vadd.f32 %v1832_v0, %v1567_v59 }
 0x798   : > { %v2077_v61 = vpop.f32.mrf.mxu0 }
 0x799   : > { %v1842_v62 = vmul.f32 -1.442695, %v1568_v60 }
 0x79b   : > { %2227 = vpow2.f32 %v1842_v62 }
 0x7a4   : > { %v2226_v63 = vpop.eup %2225 }
 0x7a5   : > { %v1577_v1 = vadd.f32 1.0, %v2226_v63 }
 0x7a7   : > { %2229 = vrcp.f32 %v1577_v1 }
 0x7a8   : > { %v2228_v2 = vpop.eup %2227 }
 0x7a9   : > { %v1578_v3 = vadd.f32 1.0, %v2228_v2 }
 0x7ab   : > { %2231 = vrcp.f32 %v1578_v3 }
 0x7b4   : > { %v2230_v4 = vpop.eup %2229 }
 0x7b5   : > { %1583 = vst [vmem:[%s478_s24] sm:$0xff] %v2230_v4 }
 0x7b8   : > { %v2232_v5 = vpop.eup %2231 }
 0x7b9   : > { %1584 = vst [vmem:[%s478_s24 + $0x8] sm:$0xff] %v2232_v5 }
 0x7ba PF: > { %s25_s17 = sadd.s32 1, %s2355_s17  }
 0x7bb   : > { %p22_p2 = scmp.ge.s32.totalorder %s25_s17, 4  }
 0x7bd   :  { %24 = sbr.rel (!%p22_p2) target bundleno = 3 (0x3), region = 126 }
 0x7c2   :  { %1626 = vsyncpa [#allocation3], 1 }
 0x7c3   :  { %1628 = vsyncpa [#allocation3 + $0x1], 1 }
 0x7c4   :  { %1629 = vsyncpa [#allocation5], 1 }
 0x7c5   :  { %1630 = vsyncpa [#allocation8], 1 }

</bundles_post_ra>
